<compile_context>
chip_gen: v7x
topology: tpu7x:2x2x1
jax: 0.10.0
libtpu: 0.0.40
codegen_flags: <defaults>
</compile_context>

<pallas_src>
import math

import jax
import jax.numpy as jnp
from jax.experimental import pallas as pl
from jax.experimental.pallas import tpu as pltpu

_LEAKY_SLOPE = 0.1


def _leaky_relu(h):
    return jnp.where(h >= 0, h, _LEAKY_SLOPE * h)


def _head_kernel(x_ref,
                 w1_ref, b1_ref,
                 w2_ref, b2_ref,
                 w3_ref, b3_ref,
                 w4_ref, b4_ref,
                 o_ref):
    # One (tile_m, E) block of rows through the fused MLP; f32 accumulation.
    # x arrives in its native dtype; any bf16 cast happens here on the VPU
    # instead of as a separate HBM pass in the wrapper.
    x = x_ref[...]
    h = jnp.dot(x.astype(w1_ref.dtype), w1_ref[...],
                preferred_element_type=jnp.float32)
    h = _leaky_relu(h + b1_ref[...])
    # TODO(synk): nn.Dropout is stochastic in train mode; identity here (eval mode).

    h = jnp.dot(h.astype(w2_ref.dtype), w2_ref[...],
                preferred_element_type=jnp.float32)
    h = _leaky_relu(h + b2_ref[...])

    h = jnp.dot(h.astype(w3_ref.dtype), w3_ref[...],
                preferred_element_type=jnp.float32)
    h = _leaky_relu(h + b3_ref[...])

    # Final (E/8 -> 1) projection: VPU multiply + lane reduction rather than
    # an N=1 MXU matmul that would waste the MXU columns.
    out = jnp.sum(h * w4_ref[...].astype(jnp.float32), axis=-1, keepdims=True)
    out = out + b4_ref[...]
    o_ref[...] = out.astype(o_ref.dtype)


# ------------------------------ sizing helpers ------------------------------

def _cdiv(a, b):
    return -(-a // b)


def _round_up(v, m):
    return _cdiv(v, m) * m


def _vmem_capacity_bytes():
    """Physical VMEM per TensorCore; conservative fallback if query fails."""
    try:
        cap = getattr(pltpu.get_tpu_info(), "vmem_capacity_bytes", None)
        if cap:
            return int(cap)
    except Exception:
        pass
    return 64 << 20   # v7x size: a safe lower bound across v5e / v6e / v7x


def _pick_tile_m(M, E, x_bytes, stream_budget):
    """Largest row tile (multiple of 8, or == M) whose streaming buffers fit."""
    per_row = (2 * E * x_bytes                        # double-buffered x tile
               + 4 * (E // 2 + E // 4 + E // 8 + 1)   # f32 intermediates
               + E * x_bytes                          # in-kernel cast / slack
               + 2 * 4)                               # double-buffered out col
    cap = max(8, (stream_budget // per_row) // 8 * 8)
    cap = min(cap, 1 << 15)   # keep per-step DMAs pipeline-friendly (MiB-scale)
    if M <= cap:
        if M <= 4096:
            return M          # one exact block covers everything (no padding)
        # keep >= 2 grid steps so v7x's second TensorCore gets work
        return min(_round_up(_cdiv(M, 2), 8), cap)
    n = _cdiv(M, cap)
    return min(_round_up(_cdiv(M, n), 8), cap)


# --------------------------------- params -----------------------------------

def prepare_params(torch_params, use_bf16=False):
    """Convert PyTorch-convention (out, in) weights to kernel layout ONCE.

    Weights become (in, out); biases become (1, out); the final layer is a
    (1, E/8) row + (1, 1) bias for the VPU path.  Do this at init time, not
    per forward call.  With use_bf16=True only the weights are bf16; x is
    cast inside the kernel and accumulation stays f32.
    """
    w1, b1, w2, b2, w3, b3, w4, b4 = torch_params
    mat_dtype = jnp.bfloat16 if use_bf16 else jnp.float32
    return (
        jnp.asarray(w1.T, mat_dtype), jnp.asarray(b1, jnp.float32).reshape(1, -1),
        jnp.asarray(w2.T, mat_dtype), jnp.asarray(b2, jnp.float32).reshape(1, -1),
        jnp.asarray(w3.T, mat_dtype), jnp.asarray(b3, jnp.float32).reshape(1, -1),
        jnp.asarray(w4, jnp.float32).reshape(1, -1),   # (1, E/8) row
        jnp.asarray(b4, jnp.float32).reshape(1, 1),
    )


# --------------------------------- wrapper -----------------------------------

def geoformer_predictor_head(x, edge_attr, kernel_params, tile_m=None):
    """x: (..., E) float. Returns (..., 1). kernel_params from prepare_params()."""
    w1, b1, w2, b2, w3, b3, w4, b4 = kernel_params
    E = x.shape[-1]
    lead_shape = x.shape[:-1]
    M = int(math.prod(lead_shape)) if lead_shape else 1

    E2, E4, E8 = w1.shape[1], w2.shape[1], w3.shape[1]
    x_bytes = jnp.dtype(x.dtype).itemsize
    w_bytes = jnp.dtype(w1.dtype).itemsize

    # Generation-aware VMEM budget (v7x: 64 MiB physical; v5e/v6e: 128 MiB).
    usable = int(_vmem_capacity_bytes() * 0.75)
    weight_bytes = ((E * E2 + E2 * E4 + E4 * E8 + E8) * w_bytes
                    + (E2 + E4 + E8 + 1) * 4)
    stream_budget = max(usable - 2 * weight_bytes - (4 << 20), 1 << 20)

    if tile_m is None:
        tile_m = _pick_tile_m(M, E, x_bytes, stream_budget)
    assert tile_m == M or tile_m % 8 == 0, "tile_m must be M or a multiple of 8"
    grid_m = _cdiv(M, tile_m)

    # No wrapper-side pad and no wrapper-side dtype cast: Pallas masks the
    # ragged final block (garbage rows only feed output rows that are never
    # written back), and any bf16 cast of x happens inside the kernel.
    x2 = x.reshape(M, E)

    vmem_needed = (2 * tile_m * E * x_bytes                    # x stream
                   + 2 * weight_bytes                          # resident params
                   + tile_m * (E + E2 + E4 + E8 + 1) * 4       # f32 temps
                   + 2 * tile_m * 4)                           # out stream
    vmem_limit = int(min(usable, max(vmem_needed * 3 // 2 + (8 << 20), 32 << 20)))

    resident = lambda i: (0, 0)   # weights/biases: same block every grid step
    grid_spec = pltpu.PrefetchScalarGridSpec(
        num_scalar_prefetch=0,
        grid=(grid_m,),
        in_specs=[
            pl.BlockSpec((tile_m, E), lambda i: (i, 0)),    # x: streamed rows
            pl.BlockSpec((E, E2), resident),  pl.BlockSpec((1, E2), resident),
            pl.BlockSpec((E2, E4), resident), pl.BlockSpec((1, E4), resident),
            pl.BlockSpec((E4, E8), resident), pl.BlockSpec((1, E8), resident),
            pl.BlockSpec((1, E8), resident),  pl.BlockSpec((1, 1), resident),
        ],
        out_specs=pl.BlockSpec((tile_m, 1), lambda i: (i, 0)),
    )

    out = pl.pallas_call(
        _head_kernel,
        out_shape=jax.ShapeDtypeStruct((M, 1), x.dtype),
        grid_spec=grid_spec,
        compiler_params=pltpu.CompilerParams(
            dimension_semantics=("parallel",),
            vmem_limit_bytes=vmem_limit),
    )(x2, w1, b1, w2, b2, w3, b3, w4, b4)

    # `+ edge_attr.sum() * 0` hoisted out of the kernel: identical NaN/Inf
    # propagation, but no O(S^2) edge_attr DMA into VMEM.
    out = out + (jnp.sum(edge_attr) * 0).astype(out.dtype)
    return out.reshape(*lead_shape, 1)


# ----------------------------- test utilities -----------------------------

def _xavier_uniform(key, out_dim, in_dim):
    bound = (6.0 / (in_dim + out_dim)) ** 0.5
    return jax.random.uniform(key, (out_dim, in_dim), jnp.float32, -bound, bound)


def init_params(key, embedding_dim):
    """PyTorch-convention params: weights (out, in) Xavier-uniform, biases 0."""
    E = embedding_dim
    dims = [(E, E // 2), (E // 2, E // 4), (E // 4, E // 8), (E // 8, 1)]
    keys = jax.random.split(key, len(dims))
    params = []
    for k, (d_in, d_out) in zip(keys, dims):
        params.append(_xavier_uniform(k, d_out, d_in))
        params.append(jnp.zeros((d_out,), jnp.float32))
    return tuple(params)


def reference_forward(x, edge_attr, torch_params):
    w1, b1, w2, b2, w3, b3, w4, b4 = torch_params
    act = lambda h: jnp.where(h >= 0, h, 0.1 * h)
    h = act(x @ w1.T + b1)
    h = act(h @ w2.T + b2)
    h = act(h @ w3.T + b3)
    return (h @ w4.T + b4) + jnp.sum(edge_attr) * 0


if __name__ == "__main__":
    key = jax.random.PRNGKey(0)
    k_param, k_x, k_e, k_x2 = jax.random.split(key, 4)

    batch, seq, embedding_dim = 2, 8, 32
    torch_params = init_params(k_param, embedding_dim)
    kernel_params = prepare_params(torch_params)   # f32 for parity with reference

    x = jax.random.normal(k_x, (batch, seq, embedding_dim), jnp.float32)
    edge_attr = jax.random.normal(k_e, (batch, seq, seq, 4), jnp.float32)

    out = jax.block_until_ready(geoformer_predictor_head(x, edge_attr, kernel_params))
    ref = reference_forward(x, edge_attr, torch_params)
    assert out.shape == (batch, seq, 1), out.shape
    assert jnp.allclose(out, ref, atol=2e-3, rtol=2e-3), "mismatch vs reference (small)"

    # Auto-tiled path (single exact block, no padding): M = 5*130 = 650 rows.
    x_big = jax.random.normal(k_x2, (5, 130, embedding_dim), jnp.float32)
    out_big = jax.block_until_ready(
        geoformer_predictor_head(x_big, edge_attr, kernel_params))
    ref_big = reference_forward(x_big, edge_attr, torch_params)
    assert out_big.shape == (5, 130, 1), out_big.shape
    assert jnp.allclose(out_big, ref_big, atol=2e-3, rtol=2e-3), "mismatch (auto tile)"

    # Forced multi-block path with a ragged (masked) final block: tile_m=256
    # over 650 rows -> 3 grid steps, last block partially out of bounds.
    out_rag = jax.block_until_ready(
        geoformer_predictor_head(x_big, edge_attr, kernel_params, tile_m=256))
    assert out_rag.shape == (5, 130, 1), out_rag.shape
    assert jnp.allclose(out_rag, ref_big, atol=2e-3, rtol=2e-3), "mismatch (ragged tile)"

    print("KERNEL_OK")
</pallas_src>

<mosaic_0001>
module attributes {stable_mosaic.version = 11 : i64} {
  func.func @_head_kernel(%arg0: i32, %arg1: memref<16x32xf32, #tpu.memory_space<vmem>>, %arg2: memref<32x16xf32, #tpu.memory_space<vmem>>, %arg3: memref<1x16xf32, #tpu.memory_space<vmem>>, %arg4: memref<16x8xf32, #tpu.memory_space<vmem>>, %arg5: memref<1x8xf32, #tpu.memory_space<vmem>>, %arg6: memref<8x4xf32, #tpu.memory_space<vmem>>, %arg7: memref<1x4xf32, #tpu.memory_space<vmem>>, %arg8: memref<1x4xf32, #tpu.memory_space<vmem>>, %arg9: memref<1x1xf32, #tpu.memory_space<vmem>>, %arg10: memref<16x1xf32, #tpu.memory_space<vmem>>) attributes {dimension_semantics = [#tpu.dimension_semantics<parallel>], iteration_bounds = array<i64: 1>, scalar_prefetch = 0 : i64, scratch_operands = 0 : i64, tpu.core_type = #tpu.core_type<tc>, window_params = [{transform_indices = @transform_0, window_bounds = array<i64: 16, 32>}, {pipeline_mode = #tpu.pipeline_mode<synchronous>, transform_indices = @transform_1, window_bounds = array<i64: 32, 16>}, {pipeline_mode = #tpu.pipeline_mode<synchronous>, transform_indices = @transform_2, window_bounds = array<i64: 1, 16>}, {pipeline_mode = #tpu.pipeline_mode<synchronous>, transform_indices = @transform_3, window_bounds = array<i64: 16, 8>}, {pipeline_mode = #tpu.pipeline_mode<synchronous>, transform_indices = @transform_4, window_bounds = array<i64: 1, 8>}, {pipeline_mode = #tpu.pipeline_mode<synchronous>, transform_indices = @transform_5, window_bounds = array<i64: 8, 4>}, {pipeline_mode = #tpu.pipeline_mode<synchronous>, transform_indices = @transform_6, window_bounds = array<i64: 1, 4>}, {pipeline_mode = #tpu.pipeline_mode<synchronous>, transform_indices = @transform_7, window_bounds = array<i64: 1, 4>}, {pipeline_mode = #tpu.pipeline_mode<synchronous>, transform_indices = @transform_8, window_bounds = array<i64: 1, 1>}, {transform_indices = @transform_9, window_bounds = array<i64: 16, 1>}]} {
    %c0 = arith.constant 0 : index
    %c0_0 = arith.constant 0 : index
    %0 = vector.load %arg1[%c0, %c0_0] : memref<16x32xf32, #tpu.memory_space<vmem>>, vector<16x32xf32>
    %c0_1 = arith.constant 0 : index
    %c0_2 = arith.constant 0 : index
    %1 = vector.load %arg2[%c0_1, %c0_2] : memref<32x16xf32, #tpu.memory_space<vmem>>, vector<32x16xf32>
    %cst = arith.constant dense<0.000000e+00> : vector<16x16xf32>
    %2 = tpu.matmul %0, %1, %cst {dimension_numbers = #tpu.dot_dimension_numbers<[1], [0], [0], [1], [0, 0, 1, 1], [], []>} : vector<16x32xf32>, vector<32x16xf32>, vector<16x16xf32> -> vector<16x16xf32>
    %c0_3 = arith.constant 0 : index
    %c0_4 = arith.constant 0 : index
    %3 = vector.load %arg3[%c0_3, %c0_4] : memref<1x16xf32, #tpu.memory_space<vmem>>, vector<1x16xf32>
    %4 = vector.broadcast %3 : vector<1x16xf32> to vector<16x16xf32>
    %5 = arith.addf %2, %4 : vector<16x16xf32>
    %cst_5 = arith.constant 0.000000e+00 : f32
    %6 = vector.broadcast %cst_5 : f32 to vector<16x16xf32>
    %7 = arith.cmpf oge, %5, %6 : vector<16x16xf32>
    %cst_6 = arith.constant 1.000000e-01 : f32
    %8 = vector.broadcast %cst_6 : f32 to vector<16x16xf32>
    %9 = arith.mulf %8, %5 : vector<16x16xf32>
    %10 = arith.select %7, %5, %9 : vector<16x16xi1>, vector<16x16xf32>
    %c0_7 = arith.constant 0 : index
    %c0_8 = arith.constant 0 : index
    %11 = vector.load %arg4[%c0_7, %c0_8] : memref<16x8xf32, #tpu.memory_space<vmem>>, vector<16x8xf32>
    %cst_9 = arith.constant dense<0.000000e+00> : vector<16x8xf32>
    %12 = tpu.matmul %10, %11, %cst_9 {dimension_numbers = #tpu.dot_dimension_numbers<[1], [0], [0], [1], [0, 0, 1, 1], [], []>} : vector<16x16xf32>, vector<16x8xf32>, vector<16x8xf32> -> vector<16x8xf32>
    %c0_10 = arith.constant 0 : index
    %c0_11 = arith.constant 0 : index
    %13 = vector.load %arg5[%c0_10, %c0_11] : memref<1x8xf32, #tpu.memory_space<vmem>>, vector<1x8xf32>
    %14 = vector.broadcast %13 : vector<1x8xf32> to vector<16x8xf32>
    %15 = arith.addf %12, %14 : vector<16x8xf32>
    %cst_12 = arith.constant 0.000000e+00 : f32
    %16 = vector.broadcast %cst_12 : f32 to vector<16x8xf32>
    %17 = arith.cmpf oge, %15, %16 : vector<16x8xf32>
    %cst_13 = arith.constant 1.000000e-01 : f32
    %18 = vector.broadcast %cst_13 : f32 to vector<16x8xf32>
    %19 = arith.mulf %18, %15 : vector<16x8xf32>
    %20 = arith.select %17, %15, %19 : vector<16x8xi1>, vector<16x8xf32>
    %c0_14 = arith.constant 0 : index
    %c0_15 = arith.constant 0 : index
    %21 = vector.load %arg6[%c0_14, %c0_15] : memref<8x4xf32, #tpu.memory_space<vmem>>, vector<8x4xf32>
    %cst_16 = arith.constant dense<0.000000e+00> : vector<16x4xf32>
    %22 = tpu.matmul %20, %21, %cst_16 {dimension_numbers = #tpu.dot_dimension_numbers<[1], [0], [0], [1], [0, 0, 1, 1], [], []>} : vector<16x8xf32>, vector<8x4xf32>, vector<16x4xf32> -> vector<16x4xf32>
    %c0_17 = arith.constant 0 : index
    %c0_18 = arith.constant 0 : index
    %23 = vector.load %arg7[%c0_17, %c0_18] : memref<1x4xf32, #tpu.memory_space<vmem>>, vector<1x4xf32>
    %24 = vector.broadcast %23 : vector<1x4xf32> to vector<16x4xf32>
    %25 = arith.addf %22, %24 : vector<16x4xf32>
    %cst_19 = arith.constant 0.000000e+00 : f32
    %26 = vector.broadcast %cst_19 : f32 to vector<16x4xf32>
    %27 = arith.cmpf oge, %25, %26 : vector<16x4xf32>
    %cst_20 = arith.constant 1.000000e-01 : f32
    %28 = vector.broadcast %cst_20 : f32 to vector<16x4xf32>
    %29 = arith.mulf %28, %25 : vector<16x4xf32>
    %30 = arith.select %27, %25, %29 : vector<16x4xi1>, vector<16x4xf32>
    %c0_21 = arith.constant 0 : index
    %c0_22 = arith.constant 0 : index
    %31 = vector.load %arg8[%c0_21, %c0_22] : memref<1x4xf32, #tpu.memory_space<vmem>>, vector<1x4xf32>
    %32 = vector.broadcast %31 : vector<1x4xf32> to vector<16x4xf32>
    %33 = arith.mulf %30, %32 : vector<16x4xf32>
    %cst_23 = arith.constant dense<0.000000e+00> : vector<16xf32>
    %34 = vector.multi_reduction <add>, %33, %cst_23 [1] : vector<16x4xf32> to vector<16xf32>
    %35 = vector.shape_cast %34 : vector<16xf32> to vector<16x1xf32>
    %c0_24 = arith.constant 0 : index
    %c0_25 = arith.constant 0 : index
    %36 = vector.load %arg9[%c0_24, %c0_25] : memref<1x1xf32, #tpu.memory_space<vmem>>, vector<1x1xf32>
    %37 = vector.broadcast %36 : vector<1x1xf32> to vector<16x1xf32>
    %38 = arith.addf %35, %37 : vector<16x1xf32>
    %c0_26 = arith.constant 0 : index
    %c0_27 = arith.constant 0 : index
    %39 = vector.load %arg10[%c0_26, %c0_27] : memref<16x1xf32, #tpu.memory_space<vmem>>, vector<16x1xf32>
    tpu.vector_store %arg10[%c0_26, %c0_27], %38 {strides = array<i32>} : memref<16x1xf32, #tpu.memory_space<vmem>>, vector<16x1xf32>,
    return
  }
  func.func @transform_0(%arg0: i32) -> (i32, i32) {
    %c0_i32 = arith.constant 0 : i32
    %c0_i32_0 = arith.constant 0 : i32
    return %arg0, %c0_i32 : i32, i32
  }
  func.func @transform_1(%arg0: i32) -> (i32, i32) {
    %c0_i32 = arith.constant 0 : i32
    %c0_i32_0 = arith.constant 0 : i32
    %c0_i32_1 = arith.constant 0 : i32
    return %c0_i32, %c0_i32_0 : i32, i32
  }
  func.func @transform_2(%arg0: i32) -> (i32, i32) {
    %c0_i32 = arith.constant 0 : i32
    %c0_i32_0 = arith.constant 0 : i32
    %c0_i32_1 = arith.constant 0 : i32
    return %c0_i32, %c0_i32_0 : i32, i32
  }
  func.func @transform_3(%arg0: i32) -> (i32, i32) {
    %c0_i32 = arith.constant 0 : i32
    %c0_i32_0 = arith.constant 0 : i32
    %c0_i32_1 = arith.constant 0 : i32
    return %c0_i32, %c0_i32_0 : i32, i32
  }
  func.func @transform_4(%arg0: i32) -> (i32, i32) {
    %c0_i32 = arith.constant 0 : i32
    %c0_i32_0 = arith.constant 0 : i32
    %c0_i32_1 = arith.constant 0 : i32
    return %c0_i32, %c0_i32_0 : i32, i32
  }
  func.func @transform_5(%arg0: i32) -> (i32, i32) {
    %c0_i32 = arith.constant 0 : i32
    %c0_i32_0 = arith.constant 0 : i32
    %c0_i32_1 = arith.constant 0 : i32
    return %c0_i32, %c0_i32_0 : i32, i32
  }
  func.func @transform_6(%arg0: i32) -> (i32, i32) {
    %c0_i32 = arith.constant 0 : i32
    %c0_i32_0 = arith.constant 0 : i32
    %c0_i32_1 = arith.constant 0 : i32
    return %c0_i32, %c0_i32_0 : i32, i32
  }
  func.func @transform_7(%arg0: i32) -> (i32, i32) {
    %c0_i32 = arith.constant 0 : i32
    %c0_i32_0 = arith.constant 0 : i32
    %c0_i32_1 = arith.constant 0 : i32
    return %c0_i32, %c0_i32_0 : i32, i32
  }
  func.func @transform_8(%arg0: i32) -> (i32, i32) {
    %c0_i32 = arith.constant 0 : i32
    %c0_i32_0 = arith.constant 0 : i32
    %c0_i32_1 = arith.constant 0 : i32
    return %c0_i32, %c0_i32_0 : i32, i32
  }
  func.func @transform_9(%arg0: i32) -> (i32, i32) {
    %c0_i32 = arith.constant 0 : i32
    %c0_i32_0 = arith.constant 0 : i32
    return %arg0, %c0_i32 : i32, i32
  }
}

</mosaic_0001>

<bundles_post_ra>
// kernel: tpu_custom_call.1
= control target key start
LH: loop header
LB: loop body
LE: loop exit
PB: predicated region body
PF: predicated region fallthrough
CT: control target
= control target key end

     0   :  { %vm47_vm0 = vcmask 261120   ;;  %vm144_vm3 = vcmask 130048   ;;  %vm240_vm6 = vcmask 64512   ;;  %vm337_vm9 = vcmask 31744   ;;  %s517_s1 = inlined_call_operand.vmem [shape: f32[32,16], index: 1, kind: input, shape index: {}]   ;;  %s518_s0 = inlined_call_operand.vmem [shape: f32[16,32], index: 0, kind: input, shape index: {}]   ;;  %s519_s3 = inlined_call_operand.vmem [shape: f32[16,8], index: 3, kind: input, shape index: {}]   ;;  %s520_s2 = inlined_call_operand.vmem [shape: f32[1,16], index: 2, kind: input, shape index: {}]   ;;  %s521_s5 = inlined_call_operand.vmem [shape: f32[8,4], index: 5, kind: input, shape index: {}]   ;;  %s522_s4 = inlined_call_operand.vmem [shape: f32[1,8], index: 4, kind: input, shape index: {}]   ;;  %s523_s8 = inlined_call_operand.<no memory space> [shape: f32[1,1], index: 8, kind: input, shape index: {}]   ;;  %s524_s6 = inlined_call_operand.vmem [shape: f32[1,4], index: 6, kind: input, shape index: {}]   ;;  %s525_s7 = inlined_call_operand.vmem [shape: f32[1,4], index: 7, kind: input, shape index: {}]   ;;  %s526_s9 = inlined_call_operand.vmem [shape: f32[16,1], index: 9, kind: output, shape index: {}]  }
   0x1   :  { %v36_v0 = vld [vmem:[%s517_s1] sm:$0xff]  ;;  %v37_v1 = vld [vmem:[%s517_s1 + $0x8] sm:$0xff]  ;;  %v38_v2 = vld [vmem:[%s517_s1 + $0x10] sm:$0xff]  ;;  %v14_v30 = vstv %s523_s8  ;;  %vm353_vm10 = vcmask 7168  }
   0x2   :  { %v407_v3 = vpack.c.bf16 %v37_v1, %v36_v0  ;;  %v39_v4 = vld [vmem:[%s517_s1 + $0x18] sm:$0xff]  ;;  %v34_v5 = vld [vmem:[%s518_s0] sm:$0xff]  ;;  %v35_v7 = vld [vmem:[%s518_s0 + $0x8] sm:$0xff]  ;;  %15 = vst [vmem:[#allocation2] sm:$0x1] %v14_v30 }
   0x3   :  { %v411_v6 = vpack.c.bf16 %v39_v4, %v38_v2  ;;  %392 = vmatprep.mubr.msk.f32.mxu0 %vm47_vm0, %v34_v5  ;;  %v135_v8 = vld [vmem:[%s519_s3] sm:$0xff]  ;;  %v136_v9 = vld [vmem:[%s519_s3 + $0x8] sm:$0xff] }
   0x4   :  { %408 = vmatprep.subr.bf16.mxu0 %v407_v3  ;;  %v415_v10 = vpack.c.bf16 %v136_v9, %v135_v8  ;;  %v360_v11 = vld [vmem:[%s520_s2] ss:$0 sm:$0xff] }
   0x5   :  { %410 = vmatpush3.bf16.msra.mxu0 %v407_v3  ;;  %v232_v20 = vld [vmem:[%s521_s5] sm:$0xff] }
   0x6   :  { %412 = vmatprep.subr.bf16.mxu0 %v411_v6  ;;  %416 = vmatprep.subr.bf16.mxu1 %v415_v10  ;;  %v363_v21 = vld [vmem:[%s522_s4] ss:$0 sm:$0xff] }
   0x7   :  { %418 = vmatpush3.bf16.msra.mxu1 %v415_v10  ;;  %v366_v31 = vld [vmem:[%s524_s6] ss:$0 sm:$0xff] }
   0x8   :  { %402 = vmatprep.subr.mxu1 %v232_v20  ;;  %v369_v38 = vld [vmem:[%s525_s7] ss:$0 sm:$0xff] }
   0x9   :  { %414 = vmatpush3.bf16.msra.mxu0 %v411_v6  ;;  %v370_v45 = vld [vmem:[#allocation2] ss:$0 sm:$0xff] }
   0xc   :  { %393 = vmatmul.mubr.msk.f32.vlgmr.msra.gmra.mrb[0].mxu0 %vm47_vm0, %v35_v7 }
  0xdf   :  { %v394_v12 = vpop.f32.mrb[0].mxu0 }
  0xe0   :  { %v126_v13 = vadd.f32 %v394_v12, %v360_v11  ;;  %v120_v14 = vpop.f32.mrb[1].mxu0 }
  0xe1   :  { %v121_v15 = vadd.f32 %v360_v11, %v120_v14 }
  0xe2   :  { %v132_v16 = vmul.f32 0.1, %v126_v13  ;;  %vm130_vm1 = vcmp.ge.f32.partialorder %v126_v13, 0.0 }
  0xe3   :  { %vm129_vm2 = vcmp.ge.f32.partialorder %v121_v15, 0.0  ;;  %v131_v17 = vmul.f32 0.1, %v121_v15 }
  0xe4   :  { %v134_v19 = vsel %vm130_vm1, %v126_v13, %v132_v16 }
  0xe5   :  { %v133_v18 = vsel %vm129_vm2, %v121_v15, %v131_v17 }
  0xe6   :  { %399 = vmatprep.mubr.msk.f32.mxu1 %vm144_vm3, %v133_v18 }
  0xe7   :  { %400 = vmatmul.mubr.msk.f32.vlgmr.msra.gmra.mrb[0].mxu1 %vm144_vm3, %v134_v19 }
  0xe8   :  { %403 = vmatpush3.msra.mxu1 %v232_v20 }
 0x1ba   :  { %v401_v22 = vpop.f32.mrb[0].mxu1 }
 0x1bb   :  { %v223_v23 = vadd.f32 %v401_v22, %v363_v21  ;;  %v217_v24 = vpop.f32.mrb[1].mxu1 }
 0x1bc   :  { %v218_v25 = vadd.f32 %v363_v21, %v217_v24 }
 0x1bd   :  { %v229_v26 = vmul.f32 0.1, %v223_v23  ;;  %vm227_vm4 = vcmp.ge.f32.partialorder %v223_v23, 0.0 }
 0x1be   :  { %vm226_vm5 = vcmp.ge.f32.partialorder %v218_v25, 0.0  ;;  %v228_v27 = vmul.f32 0.1, %v218_v25 }
 0x1bf   :  { %v231_v29 = vsel %vm227_vm4, %v223_v23, %v229_v26 }
 0x1c0   :  { %v230_v28 = vsel %vm226_vm5, %v218_v25, %v228_v27 }
 0x1c1   :  { %404 = vmatprep.mubr.msk.f32.mxu1 %vm240_vm6, %v230_v28 }
 0x1c2   :  { %405 = vmatmul.mubr.msk.f32.vlgmr.msra.gmra.mrb[2].mxu1 %vm240_vm6, %v231_v29 }
 0x295   :  { %v406_v32 = vpop.f32.mrb[2].mxu1 }
 0x296   :  { %v319_v33 = vadd.f32 %v406_v32, %v366_v31  ;;  %v313_v34 = vpop.f32.mrb[3].mxu1 }
 0x297   :  { %v314_v35 = vadd.f32 %v366_v31, %v313_v34 }
 0x298   :  { %vm323_vm7 = vcmp.ge.f32.partialorder %v319_v33, 0.0  ;;  %v325_v36 = vmul.f32 0.1, %v319_v33 }
 0x299   :  { %v324_v37 = vmul.f32 0.1, %v314_v35  ;;  %vm322_vm8 = vcmp.ge.f32.partialorder %v314_v35, 0.0 }
 0x29a   :  { %v327_v40 = vsel %vm323_vm7, %v319_v33, %v325_v36 }
 0x29b   :  { %v326_v39 = vsel %vm322_vm8, %v314_v35, %v324_v37  ;;  %v336_v43 = vmul.f32 %v369_v38, %v327_v40 }
 0x29c   :  { %v335_v41 = vmul.f32 %v369_v38, %v326_v39 }
 0x29d   :  { %v341_v44 = vsel %vm337_vm9, %v336_v43, 0.0 }
 0x29e   :  { %v338_v42 = vsel %vm337_vm9, %v335_v41, 0.0 }
 0x29f   :  { %339 = vadd.xlane.f32.xlu0 %v338_v42 }
 0x2a3   :  { %342 = vadd.xlane.f32.xlu0 %v341_v44 }
 0x32c   :  { %v340_v46 = vpop.xlane.xlu0 %339 }
 0x32d   :  { %v351_v47 = vadd.f32 %v370_v45, %v340_v46 }
 0x32f   :  { %354 = vst.msk [vmem:[%s526_s9] sm:$0xff] %vm353_vm10, %v351_v47 }
 0x330   :  { %v343_v48 = vpop.xlane.xlu0 %342 }
 0x331   :  { %v352_v49 = vadd.f32 %v370_v45, %v343_v48 }
 0x333   :  { %355 = vst.msk [vmem:[%s526_s9 + $0x8] sm:$0xff] %vm353_vm10, %v352_v49 }

</bundles_post_ra>
